<compile_context>
chip_gen: v5e
topology: v5e:2x2
jax: 0.10.0
libtpu: 0.0.40
codegen_flags: <defaults>
</compile_context>

<pallas_src>
import numpy as np
import jax
import jax.numpy as jnp
from jax.experimental import pallas as pl
from jax.experimental.pallas import tpu as pltpu


# ----------------------------- Pallas kernel -------------------------------

def _mask_loss_kernel(r_ref, logits_ref, labels_ref, out_ref):
    """Per-R-tile partial CE / dice sums.

    r_ref:      (1,) int32 SMEM scalar-prefetch — number of real (non-padded) rows.
    logits_ref: (TR, P) f32 point logits tile.
    labels_ref: (TR, P) f32 point labels tile in {0, 1}.
    out_ref:    (1, 8, 128) f32 lane-dense partial slab:
                [0, 0, 0] = sum of per-row mean BCE, [0, 0, 1] = sum of per-row dice.
    """
    i = pl.program_id(0)
    x = logits_ref[...]                      # (TR, P)
    y = labels_ref[...]                      # (TR, P)
    tr, p = x.shape
    inv_p = jnp.float32(1.0 / p)             # static — no in-kernel divide

    # Single EUP exp per element, shared by BCE and the sigmoid.
    e = jnp.exp(-jnp.abs(x))                 # exp(-|x|) in (0, 1]
    one_plus_e = 1.0 + e

    # sigmoid_ce_loss: stable BCE-with-logits, mean over points (sum * 1/P).
    ce = jnp.maximum(x, 0.0) - x * y + jnp.log1p(e)
    ce_row = jnp.sum(ce, axis=1, keepdims=True) * inv_p            # (TR, 1)

    # dice_loss: sigmoid built from the same exponential (no second exp).
    s = jnp.where(x >= 0, 1.0, e) / one_plus_e                     # sigmoid(x)
    numer = 2.0 * jnp.sum(s * y, axis=1, keepdims=True)            # (TR, 1)
    denom = jnp.sum(s + y, axis=1, keepdims=True)                  # fused lane-reduce
    dice_row = 1.0 - (numer + 1.0) / (denom + 1.0)                 # (TR, 1)

    # Mask out rows that only exist because R was padded to the tile size.
    row_ids = i * tr + jax.lax.broadcasted_iota(jnp.int32, (tr, 1), 0)
    valid = (row_ids < r_ref[0]).astype(jnp.float32)               # (TR, 1)

    ce_part = jnp.sum(ce_row * valid)                              # scalar
    dice_part = jnp.sum(dice_row * valid)                          # scalar

    # Lane-dense single output slab (one unmasked store / DMA per tile).
    sub = jax.lax.broadcasted_iota(jnp.int32, (1, 8, 128), 1)
    lane = jax.lax.broadcasted_iota(jnp.int32, (1, 8, 128), 2)
    out_ref[...] = jnp.where((sub == 0) & (lane == 0), ce_part,
                             jnp.where((sub == 0) & (lane == 1), dice_part,
                                       jnp.float32(0.0)))


def _round_up(x, m):
    return ((x + m - 1) // m) * m


def _choose_tile_rows(R, P, max_tile_rows=512, vmem_budget_bytes=24 << 20):
    """Largest sublane-aligned R-tile s.t. 2 inputs x 2 pipeline buffers fit the budget.

    Budget is sized for v7x (64 MiB physical VMEM); v5e/v6e have more headroom.
    """
    tr = vmem_budget_bytes // (2 * 2 * P * 4)        # inputs x buffers x f32
    tr = max(8, min(max_tile_rows, tr))
    tr = (tr // 8) * 8
    return min(tr, _round_up(R, 8))


def pallas_mask_losses(point_logits, point_labels, num_masks):
    """point_logits/point_labels: (R, P) f32. Returns (loss_mask, loss_dice) scalars."""
    point_logits = point_logits.astype(jnp.float32)
    point_labels = point_labels.astype(jnp.float32)
    R, P = point_logits.shape

    TR = _choose_tile_rows(R, P)
    num_tiles = -(-R // TR)
    R_pad = num_tiles * TR
    if R_pad != R:
        point_logits = jnp.pad(point_logits, ((0, R_pad - R), (0, 0)))
        point_labels = jnp.pad(point_labels, ((0, R_pad - R), (0, 0)))
    r_arr = jnp.asarray([R], dtype=jnp.int32)

    grid_spec = pltpu.PrefetchScalarGridSpec(
        num_scalar_prefetch=1,
        grid=(num_tiles,),
        in_specs=[pl.BlockSpec((TR, P), lambda i, r: (i, 0)),
                  pl.BlockSpec((TR, P), lambda i, r: (i, 0))],
        out_specs=pl.BlockSpec((1, 8, 128), lambda i, r: (i, 0, 0)),
    )
    partials = pl.pallas_call(
        _mask_loss_kernel,
        out_shape=jax.ShapeDtypeStruct((num_tiles, 8, 128), jnp.float32),
        grid_spec=grid_spec,
        compiler_params=pltpu.CompilerParams(
            dimension_semantics=("parallel",),            # independent R tiles -> megacore
            vmem_limit_bytes=48 * 1024 * 1024),
    )(r_arr, point_logits, point_labels)

    # Finalize the tiny per-tile reduction and the single division in JAX.
    inv_nm = 1.0 / jnp.float32(num_masks)
    loss_mask = jnp.sum(partials[..., 0]) * inv_nm
    loss_dice = jnp.sum(partials[..., 1]) * inv_nm
    return loss_mask, loss_dice


# ------------------------------ JAX glue ------------------------------------

def point_sample(masks, coords):
    """Bilinear sampling matching F.grid_sample(align_corners=False, padding='zeros').

    masks:  (R, H, W) f32
    coords: (R, P, 2) f32 in [0, 1]; coords[..., 0] = x (width), coords[..., 1] = y (height)
    returns (R, P) f32
    """
    R, H, W = masks.shape
    x = coords[..., 0] * W - 0.5
    y = coords[..., 1] * H - 0.5
    x0 = jnp.floor(x)
    y0 = jnp.floor(y)
    wx1 = x - x0
    wx0 = 1.0 - wx1
    wy1 = y - y0
    wy0 = 1.0 - wy1
    flat = masks.reshape(R, H * W)

    def gather(xi, yi):
        xi_i = xi.astype(jnp.int32)
        yi_i = yi.astype(jnp.int32)
        valid = (xi_i >= 0) & (xi_i < W) & (yi_i >= 0) & (yi_i < H)
        xc = jnp.clip(xi_i, 0, W - 1)
        yc = jnp.clip(yi_i, 0, H - 1)
        vals = jnp.take_along_axis(flat, yc * W + xc, axis=1)
        return jnp.where(valid, vals, 0.0)

    v00 = gather(x0, y0)
    v01 = gather(x0 + 1, y0)
    v10 = gather(x0, y0 + 1)
    v11 = gather(x0 + 1, y0 + 1)
    return wy0 * (wx0 * v00 + wx1 * v01) + wy1 * (wx0 * v10 + wx1 * v11)


def calculate_uncertainty(logits):
    return -jnp.abs(logits)


def get_uncertain_point_coords_with_randomness(coarse_masks, num_points,
                                               oversample_ratio,
                                               importance_sample_ratio,
                                               key):
    """JAX port of detectron2's helper (runs under no_grad in the original)."""
    k1, k2 = jax.random.split(key)
    R = coarse_masks.shape[0]
    num_sampled = int(num_points * oversample_ratio)
    point_coords = jax.random.uniform(k1, (R, num_sampled, 2), dtype=jnp.float32)
    point_logits = point_sample(coarse_masks, point_coords)           # (R, num_sampled)
    point_uncertainties = calculate_uncertainty(point_logits)
    num_uncertain = int(importance_sample_ratio * num_points)
    num_random = num_points - num_uncertain
    _, idx = jax.lax.top_k(point_uncertainties, num_uncertain)        # (R, num_uncertain)
    coords_uncertain = jnp.take_along_axis(point_coords, idx[..., None], axis=1)
    if num_random > 0:
        rand_coords = jax.random.uniform(k2, (R, num_random, 2), dtype=jnp.float32)
        coords = jnp.concatenate([coords_uncertain, rand_coords], axis=1)
    else:
        coords = coords_uncertain
    return coords                                                     # (R, num_points, 2)


class SetFinalCriterion:
    """JAX/Pallas port of dynamite SetFinalCriterion (mask losses only)."""

    def __init__(self, weight_dict, losses, num_points, oversample_ratio,
                 importance_sample_ratio):
        self.weight_dict = weight_dict
        self.losses = losses
        self.num_points = num_points
        self.oversample_ratio = oversample_ratio
        self.importance_sample_ratio = importance_sample_ratio

    def loss_masks(self, outputs, targets, num_masks, num_clicks_per_object, key):
        pred = outputs['pred_masks']                                  # (B, Q, H, W)
        B, Q, H, W = pred.shape

        # Per-group max over queries: one fused segment_max instead of an
        # unrolled Python slice/max loop (group sizes are static Python ints).
        seg_ids = []
        n_groups = 0
        for i in range(B):
            clicks_per_image = list(num_clicks_per_object[i])
            clicks_per_image.append(Q - sum(num_clicks_per_object[i]))
            for c in clicks_per_image:
                seg_ids.extend([n_groups] * c)
                n_groups += 1
        seg_ids = jnp.asarray(np.asarray(seg_ids, dtype=np.int32))
        src_masks = jax.ops.segment_max(pred.reshape(B * Q, H, W), seg_ids,
                                        num_segments=n_groups,
                                        indices_are_sorted=True)      # (R, H, W)
        target_masks = jnp.concatenate([t['masks'] for t in targets],
                                       axis=0).astype(jnp.float32)    # (R, H, W)

        # TODO(synk): fusing the bilinear point_sample gather directly into the
        # Pallas loss kernel (pl.ANY + manual DMA of mask rows) would remove the
        # (R, P) HBM round trips; kept in JAX here.
        point_coords = get_uncertain_point_coords_with_randomness(
            src_masks, self.num_points, self.oversample_ratio,
            self.importance_sample_ratio, key)
        point_labels = point_sample(target_masks, point_coords)       # (R, P)
        point_logits = point_sample(src_masks, point_coords)          # (R, P)

        loss_mask, loss_dice = pallas_mask_losses(point_logits, point_labels, num_masks)
        return {'loss_mask': loss_mask, 'loss_dice': loss_dice}

    def get_loss(self, loss, outputs, targets, num_masks, num_clicks_per_object, key):
        loss_map = {'masks': self.loss_masks}
        assert loss in loss_map, f'do you really want to compute {loss} loss?'
        return loss_map[loss](outputs, targets, num_masks, num_clicks_per_object, key)

    def forward(self, outputs, targets, num_clicks_per_object=None, key=None):
        targets = [dict(t) for t in targets]
        for i, t in enumerate(targets):
            targets[i]['masks'] = jnp.concatenate(
                [t['masks'], t['bg_mask'][None]], axis=0)
        num_masks = sum(int(t['labels'].shape[0]) + 1 for t in targets)
        # TODO(synk): distributed all_reduce / world-size division omitted (single device).
        num_masks = max(float(num_masks), 1.0)
        losses = {}
        for loss in self.losses:
            losses.update(self.get_loss(loss, outputs, targets, num_masks,
                                        num_clicks_per_object, key))
        # 'aux_outputs' path would repeat the same loss per aux head; not exercised here.
        return losses


# ------------------------------ main ----------------------------------------

if __name__ == "__main__":
    key = jax.random.PRNGKey(0)
    kp, km1, km2, kb1, kb2, ks = jax.random.split(key, 6)

    B, Q, H, W = 2, 7, 16, 16
    pred_masks = jax.random.normal(kp, (B, Q, H, W), dtype=jnp.float32)

    targets = [
        {'masks': (jax.random.uniform(km1, (3, H, W)) > 0.5).astype(jnp.float32),
         'bg_mask': (jax.random.uniform(kb1, (H, W)) > 0.5).astype(jnp.float32),
         'labels': jnp.arange(3, dtype=jnp.int32)},
        {'masks': (jax.random.uniform(km2, (3, H, W)) > 0.5).astype(jnp.float32),
         'bg_mask': (jax.random.uniform(kb2, (H, W)) > 0.5).astype(jnp.float32),
         'labels': jnp.arange(3, dtype=jnp.int32)},
    ]
    # clicks per object per image; remaining queries are background clicks
    num_clicks_per_object = [[2, 1, 2], [1, 2, 1]]

    criterion = SetFinalCriterion(
        weight_dict={'loss_mask': 5.0, 'loss_dice': 5.0},
        losses=['masks'],
        num_points=128,                 # lane-dense point axis
        oversample_ratio=3.0,
        importance_sample_ratio=0.75,
    )

    losses = criterion.forward({'pred_masks': pred_masks}, targets,
                               num_clicks_per_object, key=ks)
    jax.block_until_ready(losses)
    assert jnp.isfinite(losses['loss_mask']) and jnp.isfinite(losses['loss_dice'])
    print("KERNEL_OK")
</pallas_src>

<mosaic_0001>
module attributes {stable_mosaic.version = 11 : i64} {
  func.func @_mask_loss_kernel(%arg0: i32, %arg1: memref<1xi32, #tpu.memory_space<smem>>, %arg2: memref<8x128xf32, #tpu.memory_space<vmem>>, %arg3: memref<8x128xf32, #tpu.memory_space<vmem>>, %arg4: memref<1x8x128xf32, #tpu.memory_space<vmem>>) attributes {dimension_semantics = [#tpu.dimension_semantics<parallel>], iteration_bounds = array<i64: 1>, scalar_prefetch = 1 : i64, scratch_operands = 0 : i64, tpu.core_type = #tpu.core_type<tc>, window_params = [{transform_indices = @transform_0, window_bounds = array<i64: 8, 128>}, {transform_indices = @transform_1, window_bounds = array<i64: 8, 128>}, {transform_indices = @transform_2, window_bounds = array<i64: 1, 8, 128>}]} {
    %c0 = arith.constant 0 : index
    %c0_0 = arith.constant 0 : index
    %0 = vector.load %arg2[%c0, %c0_0] : memref<8x128xf32, #tpu.memory_space<vmem>>, vector<8x128xf32>
    %c0_1 = arith.constant 0 : index
    %c0_2 = arith.constant 0 : index
    %1 = vector.load %arg3[%c0_1, %c0_2] : memref<8x128xf32, #tpu.memory_space<vmem>>, vector<8x128xf32>
    %2 = math.absf %0 : vector<8x128xf32>
    %cst = arith.constant 0.000000e+00 : f32
    %3 = vector.broadcast %cst : f32 to vector<8x128xf32>
    %4 = arith.subf %3, %2 : vector<8x128xf32>
    %5 = math.exp %4 : vector<8x128xf32>
    %cst_3 = arith.constant 1.000000e+00 : f32
    %6 = vector.broadcast %cst_3 : f32 to vector<8x128xf32>
    %7 = arith.addf %6, %5 : vector<8x128xf32>
    %cst_4 = arith.constant 0.000000e+00 : f32
    %8 = vector.broadcast %cst_4 : f32 to vector<8x128xf32>
    %9 = arith.maximumf %0, %8 : vector<8x128xf32>
    %10 = arith.mulf %0, %1 : vector<8x128xf32>
    %11 = arith.subf %9, %10 : vector<8x128xf32>
    %12 = math.log1p %5 : vector<8x128xf32>
    %13 = arith.addf %11, %12 : vector<8x128xf32>
    %cst_5 = arith.constant dense<0.000000e+00> : vector<8xf32>
    %14 = vector.multi_reduction <add>, %13, %cst_5 [1] : vector<8x128xf32> to vector<8xf32>
    %15 = vector.shape_cast %14 : vector<8xf32> to vector<8x1xf32>
    %cst_6 = arith.constant 7.812500e-03 : f32
    %16 = vector.broadcast %cst_6 : f32 to vector<8x1xf32>
    %17 = arith.mulf %15, %16 : vector<8x1xf32>
    %cst_7 = arith.constant 0.000000e+00 : f32
    %18 = vector.broadcast %cst_7 : f32 to vector<8x128xf32>
    %19 = arith.cmpf oge, %0, %18 : vector<8x128xf32>
    %cst_8 = arith.constant 1.000000e+00 : f32
    %20 = vector.broadcast %cst_8 : f32 to vector<8x128xf32>
    %21 = arith.select %19, %20, %5 : vector<8x128xi1>, vector<8x128xf32>
    %22 = arith.divf %21, %7 : vector<8x128xf32>
    %23 = arith.mulf %22, %1 : vector<8x128xf32>
    %cst_9 = arith.constant dense<0.000000e+00> : vector<8xf32>
    %24 = vector.multi_reduction <add>, %23, %cst_9 [1] : vector<8x128xf32> to vector<8xf32>
    %25 = vector.shape_cast %24 : vector<8xf32> to vector<8x1xf32>
    %cst_10 = arith.constant 2.000000e+00 : f32
    %26 = vector.broadcast %cst_10 : f32 to vector<8x1xf32>
    %27 = arith.mulf %26, %25 : vector<8x1xf32>
    %28 = arith.addf %22, %1 : vector<8x128xf32>
    %cst_11 = arith.constant dense<0.000000e+00> : vector<8xf32>
    %29 = vector.multi_reduction <add>, %28, %cst_11 [1] : vector<8x128xf32> to vector<8xf32>
    %30 = vector.shape_cast %29 : vector<8xf32> to vector<8x1xf32>
    %cst_12 = arith.constant 1.000000e+00 : f32
    %31 = vector.broadcast %cst_12 : f32 to vector<8x1xf32>
    %32 = arith.addf %27, %31 : vector<8x1xf32>
    %cst_13 = arith.constant 1.000000e+00 : f32
    %33 = vector.broadcast %cst_13 : f32 to vector<8x1xf32>
    %34 = arith.addf %30, %33 : vector<8x1xf32>
    %35 = arith.divf %32, %34 : vector<8x1xf32>
    %cst_14 = arith.constant 1.000000e+00 : f32
    %36 = vector.broadcast %cst_14 : f32 to vector<8x1xf32>
    %37 = arith.subf %36, %35 : vector<8x1xf32>
    %c8_i32 = arith.constant 8 : i32
    %38 = arith.muli %arg0, %c8_i32 : i32
    %39 = tpu.iota {dimensions = array<i32: 0>} : vector<8x1xi32>
    %40 = vector.broadcast %38 : i32 to vector<8x1xi32>
    %41 = arith.addi %40, %39 : vector<8x1xi32>
    %c0_15 = arith.constant 0 : index
    %42 = memref.load %arg1[%c0_15] : memref<1xi32, #tpu.memory_space<smem>>
    %43 = vector.broadcast %42 : i32 to vector<8x1xi32>
    %44 = arith.cmpi slt, %41, %43 : vector<8x1xi32>
    %45 = arith.extui %44 : vector<8x1xi1> to vector<8x1xi32>
    %46 = arith.sitofp %45 : vector<8x1xi32> to vector<8x1xf32>
    %47 = arith.mulf %17, %46 : vector<8x1xf32>
    %48 = vector.shape_cast %47 : vector<8x1xf32> to vector<1x8x1xf32>
    %cst_16 = arith.constant dense<0.000000e+00> : vector<1xf32>
    %49 = vector.multi_reduction <add>, %48, %cst_16 [1, 2] : vector<1x8x1xf32> to vector<1xf32>
    %50 = vector.shape_cast %49 : vector<1xf32> to vector<1x1x1xf32>
    %51 = vector.extract %50[0, 0, 0] : f32 from vector<1x1x1xf32>
    %52 = arith.mulf %37, %46 : vector<8x1xf32>
    %53 = vector.shape_cast %52 : vector<8x1xf32> to vector<1x8x1xf32>
    %cst_17 = arith.constant dense<0.000000e+00> : vector<1xf32>
    %54 = vector.multi_reduction <add>, %53, %cst_17 [1, 2] : vector<1x8x1xf32> to vector<1xf32>
    %55 = vector.shape_cast %54 : vector<1xf32> to vector<1x1x1xf32>
    %56 = vector.extract %55[0, 0, 0] : f32 from vector<1x1x1xf32>
    %57 = tpu.iota {dimensions = array<i32: 1>} : vector<1x8x128xi32>
    %58 = tpu.iota {dimensions = array<i32: 2>} : vector<1x8x128xi32>
    %c0_i32 = arith.constant 0 : i32
    %59 = vector.broadcast %c0_i32 : i32 to vector<1x8x128xi32>
    %60 = arith.cmpi eq, %57, %59 : vector<1x8x128xi32>
    %c0_i32_18 = arith.constant 0 : i32
    %61 = vector.broadcast %c0_i32_18 : i32 to vector<1x8x128xi32>
    %62 = arith.cmpi eq, %58, %61 : vector<1x8x128xi32>
    %63 = arith.andi %60, %62 : vector<1x8x128xi1>
    %c0_i32_19 = arith.constant 0 : i32
    %64 = vector.broadcast %c0_i32_19 : i32 to vector<1x8x128xi32>
    %65 = arith.cmpi eq, %57, %64 : vector<1x8x128xi32>
    %c1_i32 = arith.constant 1 : i32
    %66 = vector.broadcast %c1_i32 : i32 to vector<1x8x128xi32>
    %67 = arith.cmpi eq, %58, %66 : vector<1x8x128xi32>
    %68 = arith.andi %65, %67 : vector<1x8x128xi1>
    %cst_20 = arith.constant 0.000000e+00 : f32
    %69 = vector.broadcast %56 : f32 to vector<1x8x128xf32>
    %70 = vector.broadcast %cst_20 : f32 to vector<1x8x128xf32>
    %71 = arith.select %68, %69, %70 : vector<1x8x128xi1>, vector<1x8x128xf32>
    %72 = vector.broadcast %51 : f32 to vector<1x8x128xf32>
    %73 = arith.select %63, %72, %71 : vector<1x8x128xi1>, vector<1x8x128xf32>
    %c0_21 = arith.constant 0 : index
    %c0_22 = arith.constant 0 : index
    %c0_23 = arith.constant 0 : index
    %74 = vector.load %arg4[%c0_21, %c0_22, %c0_23] : memref<1x8x128xf32, #tpu.memory_space<vmem>>, vector<1x8x128xf32>
    tpu.vector_store %arg4[%c0_21, %c0_22, %c0_23], %73 {strides = array<i32>} : memref<1x8x128xf32, #tpu.memory_space<vmem>>, vector<1x8x128xf32>,
    return
  }
  func.func @transform_0(%arg0: i32, %arg1: memref<1xi32, #tpu.memory_space<smem>>) -> (i32, i32) {
    %c0_i32 = arith.constant 0 : i32
    %c0_i32_0 = arith.constant 0 : i32
    return %arg0, %c0_i32 : i32, i32
  }
  func.func @transform_1(%arg0: i32, %arg1: memref<1xi32, #tpu.memory_space<smem>>) -> (i32, i32) {
    %c0_i32 = arith.constant 0 : i32
    %c0_i32_0 = arith.constant 0 : i32
    return %arg0, %c0_i32 : i32, i32
  }
  func.func @transform_2(%arg0: i32, %arg1: memref<1xi32, #tpu.memory_space<smem>>) -> (i32, i32, i32) {
    %c0_i32 = arith.constant 0 : i32
    %c0_i32_0 = arith.constant 0 : i32
    %c0_i32_1 = arith.constant 0 : i32
    return %arg0, %c0_i32, %c0_i32_0 : i32, i32, i32
  }
}

</mosaic_0001>

<bundles_post_ra>
// kernel: tpu_custom_call.1
= control target key start
LH: loop header
LB: loop body
LE: loop exit
PB: predicated region body
PF: predicated region fallthrough
CT: control target
= control target key end

     0   :  { %9 = vsyncpa [#allocation5], 0  ;;  %s303_s0 = inlined_call_operand.<no memory space> [shape: s32[1], index: 0, kind: input, shape index: {}]   ;;  %s304_s1 = inlined_call_operand.hbm [shape: f32[8,128], index: 1, kind: input, shape index: {}]   ;;  %s305_s2 = inlined_call_operand.hbm [shape: f32[8,128], index: 2, kind: input, shape index: {}]   ;;  %s306_s3 = inlined_call_operand.hbm [shape: f32[1,8,128], index: 3, kind: output, shape index: {}]  }
   0x1   :  { %10 = vsyncpa [#allocation8], 0 }
   0x2   :  { %11 = vsyncpa [#allocation6], 0  ;;  %s17_s14 = sshll.u32 %s304_s1, 4  ;;  %s265_s15 = smov [#allocation4]   ;;  %s18_s14 = int_to_ptr.hbm [resolvable:$true] %s17_s14 }
   0x3   :  { %s19_s16 = sshll.u32 %s265_s15, 4  ;;  %s28_s19 = sshll.u32 %s305_s2, 4  ;;  %s20_s16 = int_to_ptr.vmem [resolvable:$true] %s19_s16  ;;  %s29_s19 = int_to_ptr.hbm [resolvable:$true] %s28_s19 }
   0x4   :  { %22 = dma.hbm_to_vmem [thread:$0]  %s18_s14, 128, %s20_s16, [#allocation5]  }
   0x5   :  { %s266_s20 = smov [#allocation7]  }
   0x6   :  { %s30_s21 = sshll.u32 %s266_s20, 4  ;;  %s31_s21 = int_to_ptr.vmem [resolvable:$true] %s30_s21 }
   0x7   :  { %33 = dma.hbm_to_vmem [thread:$0]  %s29_s19, 128, %s31_s21, [#allocation8]  }
   0x8   :  { %259 = dma.done.wait [#allocation5], 128  }
   0x9   :  { %260 = vsyncadd [#allocation5], 4294967168 }
   0xa   :  { %261 = dma.done.wait [#allocation8], 128  }
   0xb   :  { %262 = vsyncadd [#allocation8], 4294967168  ;;  %v42_v0 = vld [vmem:[#allocation4] sm:$0xff]  ;;  %v43_v7 = vld [vmem:[#allocation7] sm:$0xff]  ;;  %v108_v32 = vlaneseq  ;;  %v113_v34 = vstv %s303_s0  ;;  %v267_v36 = vmov 0.0   ;;  %vm118_vm7 = vcmask 7168  }
   0xc   :  { %v44_v1 = vand.u32 2147483647, %v42_v0  ;;  %v49_v9 = vmax.f32 %v42_v0, 0.0  ;;  %v50_v10 = vmul.f32 %v43_v7, %v42_v0  ;;  %vm65_vm3 = vcmp.ge.f32.partialorder %v42_v0, 0.0  ;;  %s268_s0 = smov [#allocation9]   ;;  %s159_s26 = sshll.u32 %s306_s3, 4  ;;  %s160_s26 = int_to_ptr.hbm [resolvable:$true] %s159_s26 }
   0xd   :  { %v109_v33 = vshrl.u32 %v108_v32, 7  ;;  %s157_s22 = sshll.u32 %s268_s0, 4  ;;  %s158_s22 = int_to_ptr.vmem [resolvable:$true] %s157_s22 }
   0xe   :  { %v45_v2 = vsub.f32 0.0, %v44_v1  ;;  %v51_v16 = vsub.f32 %v49_v9, %v50_v10  ;;  %v141_v10 = vand.u32 127, %v108_v32 }
   0xf   :  { %vm114_vm6 = vcmp.lt.s32.totalorder %v109_v33, %v113_v34  ;;  %vm142_vm12 = vcmp.eq.s32.totalorder %v109_v33, 0 }
  0x10   :  { %v46_v3 = vmul.f32 1.442695, %v45_v2  ;;  %v170_v37 = vsel %vm114_vm6, 1.0, %v267_v36  ;;  %vm145_vm13 = vcmp.eq.s32.totalorder %v141_v10, 1  ;;  %vm143_vm14 = vcmp.eq.s32.totalorder %v141_v10, 0 }
  0x11   :  { %vm146_vm15 = vmand %vm142_vm12, %vm145_vm13 }
  0x12   :  { %179 = vpow2.f32 %v46_v3 }
  0x18   :  { %v180_v4 = vpop.eup %179 }
  0x19   :  { %v48_v5 = vadd.f32 1.0, %v180_v4  ;;  %v55_v6 = vmul.f32 -0.5, %v180_v4  ;;  %v58_v11 = vand.u32 2147483647, %v180_v4  ;;  %v66_v26 = vsel %vm65_vm3, 1.0, %v180_v4 }
  0x1b   :  { %181 = vrcp.f32 %v48_v5  ;;  %v56_v8 = vadd.f32 1.0, %v55_v6  ;;  %vm59_vm0 = vcmp.lt.f32.partialorder %v58_v11, 0.0004427343  ;;  %v78_v17 = vand.u32 2147483648, %v48_v5 }
  0x1c   :  { %183 = vlog2.f32 %v48_v5  ;;  %vm72_vm1 = vweird.f32 %v48_v5  ;;  %v76_v20 = vand.u32 2147483647, %v48_v5 }
  0x1d   :  { %v57_v13 = vmul.f32 %v180_v4, %v56_v8  ;;  %v79_v24 = vor.u32 1.1754944e-38, %v78_v17 }
  0x1e   :  { %vm77_vm5 = vcmp.eq.f32.partialorder %v76_v20, 8.507059e+37 }
  0x21   :  { %v182_v12 = vpop.eup %181 }
  0x22   :  { %v184_v14 = vpop.eup %183  ;;  %v68_v15 = vmul.f32 %v182_v12, %v48_v5  ;;  %vm73_vm2 = vweird.f32 %v182_v12 }
  0x23   :  { %v54_v18 = vmul.f32 0.6931472, %v184_v14  ;;  %vm74_vm4 = vmor %vm72_vm1, %vm73_vm2 }
  0x24   :  { %v69_v19 = vsub.f32 1.0, %v68_v15 }
  0x25   :  { %v60_v21 = vsel %vm59_vm0, %v57_v13, %v54_v18  ;;  %vm144_vm0 = vmand %vm142_vm12, %vm143_vm14 }
  0x26   :  { %v70_v22 = vmul.f32 %v182_v12, %v69_v19  ;;  %v61_v23 = vadd.f32 %v60_v21, %v51_v16 }
  0x28   :  { %v71_v25 = vadd.f32 %v182_v12, %v70_v22  ;;  %62 = vadd.xlane.f32.xlu1 %v61_v23 }
  0x2a   :  { %v75_v27 = vsel %vm74_vm4, %v182_v12, %v71_v25 }
  0x2b   :  { %v80_v28 = vsel %vm77_vm5, %v79_v24, %v75_v27 }
  0x2c   :  { %v81_v29 = vmul.f32 %v80_v28, %v66_v26 }
  0x2e   :  { %v86_v30 = vadd.f32 %v81_v29, %v43_v7  ;;  %v82_v31 = vmul.f32 %v81_v29, %v43_v7 }
  0x30   :  { %87 = vadd.xlane.f32.xlu0 %v86_v30 }
  0x38   :  { %83 = vadd.xlane.f32.xlu0 %v82_v31 }
  0x9b   :  { %v63_v35 = vpop.xlane.xlu1 %62 }
  0x9c   :  { %v64_v38 = vmul.f32 0.0078125, %v63_v35 }
  0x9e   :  { %v117_v39 = vmul.f32 %v170_v37, %v64_v38 }
  0xa0   :  { %v119_v40 = vsel %vm118_vm7, %v117_v39, 0.0 }
  0xa1   :  { %120 = vadd.xlane.f32.xlu1 %v119_v40 }
  0xa3   :  { %v88_v41 = vpop.xlane.xlu0 %87 }
  0xa4   :  { %v90_v42 = vadd.f32 1.0, %v88_v41 }
  0xa6   :  { %185 = vrcp.f32 %v90_v42  ;;  %v102_v48 = vand.u32 2147483648, %v90_v42  ;;  %v100_v50 = vand.u32 2147483647, %v90_v42  ;;  %vm96_vm9 = vweird.f32 %v90_v42 }
  0xa8   :  { %v103_v53 = vor.u32 1.1754944e-38, %v102_v48  ;;  %vm101_vm11 = vcmp.eq.f32.partialorder %v100_v50, 8.507059e+37 }
  0xab   :  { %v84_v44 = vpop.xlane.xlu0 %83 }
  0xac   :  { %v186_v43 = vpop.eup %185  ;;  %v85_v47 = vmul.f32 2.0, %v84_v44 }
  0xad   :  { %v92_v45 = vmul.f32 %v186_v43, %v90_v42  ;;  %vm97_vm8 = vweird.f32 %v186_v43 }
  0xae   :  { %v89_v52 = vadd.f32 1.0, %v85_v47  ;;  %vm98_vm10 = vmor %vm96_vm9, %vm97_vm8 }
  0xaf   :  { %v93_v46 = vsub.f32 1.0, %v92_v45 }
  0xb1   :  { %v94_v49 = vmul.f32 %v186_v43, %v93_v46 }
  0xb3   :  { %v95_v51 = vadd.f32 %v186_v43, %v94_v49 }
  0xb5   :  { %v99_v54 = vsel %vm98_vm10, %v186_v43, %v95_v51 }
  0xb6   :  { %v104_v55 = vsel %vm101_vm11, %v103_v53, %v99_v54 }
  0xb7   :  { %v105_v56 = vmul.f32 %v104_v55, %v89_v52 }
  0xb9   :  { %v106_v57 = vsub.f32 1.0, %v105_v56 }
  0xbb   :  { %v129_v58 = vmul.f32 %v170_v37, %v106_v57 }
  0xbd   :  { %v130_v59 = vsel %vm118_vm7, %v129_v58, 0.0 }
  0xbe   :  { %131 = vadd.xlane.f32.xlu2 %v130_v59 }
 0x114   :  { %v121_v60 = vpop.xlane.xlu1 %120 }
 0x115   :  { %v122_v61 = vrot.slane %v121_v60, 4 }
 0x117   :  { %v123_v62 = vadd.f32 %v122_v61, %v121_v60 }
 0x119   :  { %v124_v63 = vrot.slane %v123_v62, 2 }
 0x11b   :  { %v125_v0 = vadd.f32 %v124_v63, %v123_v62 }
 0x11d   :  { %v126_v1 = vrot.slane %v125_v0, 1 }
 0x11f   :  { %v127_v2 = vadd.f32 %v126_v1, %v125_v0 }
 0x121   :  { %171 = vpush %v127_v2 }
 0x131   :  { %v132_v3 = vpop.xlane.xlu2 %131 }
 0x132   :  { %v133_v4 = vrot.slane %v132_v3, 4 }
 0x134   :  { %v134_v5 = vadd.f32 %v133_v4, %v132_v3 }
 0x136   :  { %v135_v6 = vrot.slane %v134_v5, 2 }
 0x138   :  { %v136_v7 = vadd.f32 %v135_v6, %v134_v5 }
 0x13a   :  { %v137_v8 = vrot.slane %v136_v7, 1 }
 0x13c   :  { %v138_v9 = vadd.f32 %v137_v8, %v136_v7 }
 0x13e   :  { %173 = vpush %v138_v9 }
 0x152   :  { %s172_s23 = spop %171 }
 0x153   :  { %v149_v12 = vstv %s172_s23 }
 0x16f   :  { %s174_s27 = spop %173 }
 0x170   :  { %v147_v11 = vstv %s174_s27 }
 0x171   :  { %v148_v13 = vsel %vm146_vm15, %v147_v11, 0.0 }
 0x172   :  { %v150_v14 = vsel %vm144_vm0, %v149_v12, %v148_v13 }
 0x173   :  { %151 = vst [vmem:[#allocation9] sm:$0xff] %v150_v14 }
 0x174   :  { %162 = dma.vmem_to_hbm [thread:$0]  %s158_s22, 128, %s160_s26, [#allocation6]  }
 0x175   :  { %263 = dma.done.wait [#allocation6], 128  }
 0x176   :  { %264 = vsyncadd [#allocation6], 4294967168 }
 0x177   :  { %167 = vsyncpa [#allocation5], 1 }
 0x178   :  { %168 = vsyncpa [#allocation8], 1 }
 0x179   :  { %169 = vsyncpa [#allocation6], 1 }

</bundles_post_ra>
